<compile_context>
chip_gen: v7x
topology: tpu7x:2x2x1
jax: 0.10.0
libtpu: 0.0.40
codegen_flags: <defaults>
</compile_context>

<pallas_src>
import functools
import math

import jax
import jax.numpy as jnp
from jax.experimental import pallas as pl
from jax.experimental.pallas import tpu as pltpu


# -----------------------------------------------------------------------------
# Bilinear interpolation matrix (align_corners=True), shape (n_out, n_in).
# -----------------------------------------------------------------------------
def _interp_matrix(n_in, n_out):
    if n_in == 1:
        return jnp.ones((n_out, 1), dtype=jnp.float32)
    pos = jnp.arange(n_out, dtype=jnp.float32) * (n_in - 1) / (n_out - 1)
    lo = jnp.clip(jnp.floor(pos).astype(jnp.int32), 0, n_in - 2)
    frac = pos - lo.astype(jnp.float32)
    rows = jnp.arange(n_out)
    m = jnp.zeros((n_out, n_in), dtype=jnp.float32)
    m = m.at[rows, lo].set(1.0 - frac)
    m = m.at[rows, lo + 1].add(frac)
    return m


def _pick_batch_tile(n, h0):
    """Largest divisor of n that still leaves >=2 grid steps (megacore)."""
    tile = 1
    for t in (16, 8, 4, 2):
        if n % t == 0 and n // t >= 2:
            tile = t
            break
    # (8,128) rule: the sublane dim of each block must be a multiple of 8 or
    # span the full array -> fall back to one full-batch block if needed.
    if (tile * h0) % 8 != 0:
        tile = n
    return tile


# -----------------------------------------------------------------------------
# Fused kernel: all stages of conv1x1(+BN)+ReLU+bilinear x2, one batch tile per
# grid step.  Activation layout is a 2-D slab  [(img, h), (chan, w)].
#   refs = (x, (mconv, shift, mwup, ah) * n_stages, out)
# -----------------------------------------------------------------------------
def _make_fused_kernel(n_stages, b_tile, h0):
    def kernel(*refs):
        x_ref, o_ref = refs[0], refs[-1]
        p = refs[1:-1]
        a = x_ref[...].astype(jnp.float32)            # (b_tile*h, cin*w)
        h = h0
        for s in range(n_stages):
            mconv = p[4 * s][...]                     # (cin*w, cout*w)
            shift = p[4 * s + 1][...]                 # (1, cout*w)  hoisted shift
            mwup = p[4 * s + 2][...]                  # (cout*w, cout*2w)
            ah = p[4 * s + 3][...]                    # (2h, h)
            # 1x1 conv (BN scale folded) as ONE lane-dense matmul + shift + ReLU.
            a = jnp.dot(a, mconv, preferred_element_type=jnp.float32) + shift
            a = jnp.maximum(a, 0.0)
            # Width upsample: all channels in one matmul (block-diag interp).
            a = jnp.dot(a, mwup, preferred_element_type=jnp.float32)
            # Height upsample: one left-matmul per image of the batch tile.
            if b_tile == 1:
                a = jnp.dot(ah, a, preferred_element_type=jnp.float32)
            else:
                a = jnp.concatenate(
                    [jnp.dot(ah, a[i * h:(i + 1) * h, :],
                             preferred_element_type=jnp.float32)
                     for i in range(b_tile)],
                    axis=0)
            h *= 2
        o_ref[...] = a.astype(o_ref.dtype)

    return kernel


# -----------------------------------------------------------------------------
# Forward
# -----------------------------------------------------------------------------
@functools.partial(jax.jit, static_argnames=("up_factor",))
def up_forward(x_nchw, params, up_factor=2):
    """Pallas implementation of Up.forward; x is NCHW like PyTorch."""
    assert up_factor in (2, 4, 8)
    n_stages = {2: 1, 4: 2, 8: 3}[up_factor]
    assert len(params) == n_stages, (len(params), n_stages)
    eps = 1e-5

    n, cin0, h0, w0 = x_nchw.shape

    # ---- per-stage constants: folded BN + kron'd conv / interp matrices -----
    stage_inputs = []
    h, w, cin = h0, w0, cin0
    for prm in params:
        cout = prm["w"].shape[1]
        inv = prm["gamma"] * jax.lax.rsqrt(prm["var"] + eps)          # (cout,)
        w_fold = (prm["w"] * inv[None, :]).astype(jnp.float32)        # (cin, cout)
        shift = (prm["beta"] - prm["mean"] * inv).astype(jnp.float32)

        mconv = jnp.kron(w_fold, jnp.eye(w, dtype=jnp.float32))       # (cin*w, cout*w)
        shift_rep = jnp.repeat(shift, w)[None, :]                     # (1, cout*w)
        aw_t = _interp_matrix(w, 2 * w).T                             # (w, 2w)
        mwup = jnp.kron(jnp.eye(cout, dtype=jnp.float32), aw_t)       # (cout*w, cout*2w)
        ah = _interp_matrix(h, 2 * h)                                 # (2h, h)

        stage_inputs += [mconv, shift_rep, mwup, ah]
        h, w, cin = 2 * h, 2 * w, cout
    h_out, w_out, c_out = h, w, cin

    # ---- lane-dense 2-D slab layout: rows=(n,h), lanes=(c,w) ----------------
    x_slab = jnp.transpose(x_nchw.astype(jnp.float32), (0, 2, 1, 3))
    x_slab = x_slab.reshape(n * h0, cin0 * w0)

    b_tile = _pick_batch_tile(n, h0)
    grid = (n // b_tile,)

    in_block = b_tile * h0 * cin0 * w0
    out_block = b_tile * h_out * c_out * w_out
    param_elems = sum(math.prod(a.shape) for a in stage_inputs)
    vmem_bytes = 4 * (2 * in_block + 2 * out_block + param_elems) + (8 << 20)
    vmem_bytes = int(min(max(vmem_bytes, 16 << 20), 64 << 20))

    in_specs = [pl.BlockSpec((b_tile * h0, cin0 * w0), lambda i: (i, 0))]
    for arr in stage_inputs:                       # VMEM-resident constants
        in_specs.append(pl.BlockSpec(arr.shape, lambda i: (0, 0)))

    out_slab = pl.pallas_call(
        _make_fused_kernel(n_stages, b_tile, h0),
        out_shape=jax.ShapeDtypeStruct((n * h_out, c_out * w_out), jnp.float32),
        grid=grid,
        in_specs=in_specs,
        out_specs=pl.BlockSpec((b_tile * h_out, c_out * w_out), lambda i: (i, 0)),
        compiler_params=pltpu.CompilerParams(
            dimension_semantics=("parallel",),
            vmem_limit_bytes=vmem_bytes,
        ),
    )(x_slab, *stage_inputs)

    out = out_slab.reshape(n, h_out, c_out, w_out)
    return jnp.transpose(out, (0, 2, 1, 3))        # back to NCHW


# -----------------------------------------------------------------------------
# Parameter init (deterministic)
# -----------------------------------------------------------------------------
def init_up_params(key, in_channels, up_factor=2, channel_red=True):
    assert up_factor in (2, 4, 8)
    chans = []
    c1 = in_channels // 2 if channel_red else in_channels
    chans.append((in_channels, c1))
    if up_factor in (4, 8):
        chans.append((c1, in_channels // 4))
    if up_factor == 8:
        chans.append((in_channels // 4, in_channels // 8))

    params = []
    for (cin, cout) in chans:
        key, k1, k2, k3, k4, k5 = jax.random.split(key, 6)
        w = jax.random.normal(k1, (cin, cout), dtype=jnp.float32) * 0.1
        gamma = 1.0 + 0.1 * jax.random.normal(k2, (cout,), dtype=jnp.float32)
        beta = 0.1 * jax.random.normal(k3, (cout,), dtype=jnp.float32)
        mean = 0.1 * jax.random.normal(k4, (cout,), dtype=jnp.float32)
        var = jnp.abs(jax.random.normal(k5, (cout,), dtype=jnp.float32)) + 0.5
        params.append(dict(w=w, gamma=gamma, beta=beta, mean=mean, var=var))
    return params


# Pure-JAX reference (for correctness verification only).
def _reference(x, params, eps=1e-5):
    for p in params:
        inv = p["gamma"] / jnp.sqrt(p["var"] + eps)
        y = jnp.einsum("nchw,co->nohw", x, p["w"])
        y = y * inv[None, :, None, None] \
            + (p["beta"] - p["mean"] * inv)[None, :, None, None]
        y = jnp.maximum(y, 0.0)
        h, w = y.shape[2], y.shape[3]
        ah = _interp_matrix(h, 2 * h)
        aw = _interp_matrix(w, 2 * w)
        y = jnp.einsum("Hh,nchw->ncHw", ah, y)
        y = jnp.einsum("Ww,nchw->nchW", aw, y)
        x = y
    return x


# -----------------------------------------------------------------------------
if __name__ == "__main__":
    key = jax.random.PRNGKey(0)
    N, Cin, H, W = 2, 8, 16, 16
    kx, kp = jax.random.split(key)
    x = jax.random.normal(kx, (N, Cin, H, W), dtype=jnp.float32)

    for up_factor in (4, 8):                     # 2-stage and 3-stage paths
        params = init_up_params(kp, Cin, up_factor=up_factor, channel_red=True)
        out = jax.block_until_ready(up_forward(x, params, up_factor=up_factor))

        expected_c = Cin // up_factor
        assert out.shape == (N, expected_c, H * up_factor, W * up_factor), out.shape
        assert bool(jnp.all(jnp.isfinite(out)))

        ref = jax.block_until_ready(_reference(x, params))
        max_err = float(jnp.max(jnp.abs(out - ref)))
        assert max_err < 1e-3, f"up_factor={up_factor}: mismatch vs ref {max_err}"

    print("KERNEL_OK")
</pallas_src>

<mosaic_0001>
module attributes {stable_mosaic.version = 11 : i64} {
  func.func private @main(%arg0: i32) attributes {dimension_semantics = [#tpu.dimension_semantics<core_parallel>], iteration_bounds = array<i64: 2>, tpu.core_type = #tpu.core_type<sc_scalar_subcore>, window_params = []} {
    return
  }
}

module attributes {stable_mosaic.version = 11 : i64} {
  func.func private @main(%arg0: i32) attributes {dimension_semantics = [#tpu.dimension_semantics<core_parallel>], iteration_bounds = array<i64: 2>, tpu.core_type = #tpu.core_type<sc_scalar_subcore>, window_params = []} {
    return
  }
}

module attributes {stable_mosaic.version = 11 : i64} {
  func.func @kernel(%arg0: i32, %arg1: memref<16x128xf32, #tpu.memory_space<vmem>>, %arg2: memref<128x64xf32, #tpu.memory_space<vmem>>, %arg3: memref<1x64xf32, #tpu.memory_space<vmem>>, %arg4: memref<64x128xf32, #tpu.memory_space<vmem>>, %arg5: memref<32x16xf32, #tpu.memory_space<vmem>>, %arg6: memref<128x64xf32, #tpu.memory_space<vmem>>, %arg7: memref<1x64xf32, #tpu.memory_space<vmem>>, %arg8: memref<64x128xf32, #tpu.memory_space<vmem>>, %arg9: memref<64x32xf32, #tpu.memory_space<vmem>>, %arg10: memref<64x128xf32, #tpu.memory_space<vmem>>) attributes {dimension_semantics = [#tpu.dimension_semantics<parallel>], iteration_bounds = array<i64: 2>, scalar_prefetch = 0 : i64, scratch_operands = 0 : i64, tpu.core_type = #tpu.core_type<tc>, window_params = [{transform_indices = @transform_0, window_bounds = array<i64: 16, 128>}, {pipeline_mode = #tpu.pipeline_mode<synchronous>, transform_indices = @transform_1, window_bounds = array<i64: 128, 64>}, {pipeline_mode = #tpu.pipeline_mode<synchronous>, transform_indices = @transform_2, window_bounds = array<i64: 1, 64>}, {pipeline_mode = #tpu.pipeline_mode<synchronous>, transform_indices = @transform_3, window_bounds = array<i64: 64, 128>}, {pipeline_mode = #tpu.pipeline_mode<synchronous>, transform_indices = @transform_4, window_bounds = array<i64: 32, 16>}, {pipeline_mode = #tpu.pipeline_mode<synchronous>, transform_indices = @transform_5, window_bounds = array<i64: 128, 64>}, {pipeline_mode = #tpu.pipeline_mode<synchronous>, transform_indices = @transform_6, window_bounds = array<i64: 1, 64>}, {pipeline_mode = #tpu.pipeline_mode<synchronous>, transform_indices = @transform_7, window_bounds = array<i64: 64, 128>}, {pipeline_mode = #tpu.pipeline_mode<synchronous>, transform_indices = @transform_8, window_bounds = array<i64: 64, 32>}, {transform_indices = @transform_9, window_bounds = array<i64: 64, 128>}]} {
    %c0 = arith.constant 0 : index
    %c0_0 = arith.constant 0 : index
    %0 = vector.load %arg1[%c0, %c0_0] : memref<16x128xf32, #tpu.memory_space<vmem>>, vector<16x128xf32>
    %c0_1 = arith.constant 0 : index
    %c0_2 = arith.constant 0 : index
    %1 = vector.load %arg2[%c0_1, %c0_2] : memref<128x64xf32, #tpu.memory_space<vmem>>, vector<128x64xf32>
    %c0_3 = arith.constant 0 : index
    %c0_4 = arith.constant 0 : index
    %2 = vector.load %arg3[%c0_3, %c0_4] : memref<1x64xf32, #tpu.memory_space<vmem>>, vector<1x64xf32>
    %c0_5 = arith.constant 0 : index
    %c0_6 = arith.constant 0 : index
    %3 = vector.load %arg4[%c0_5, %c0_6] : memref<64x128xf32, #tpu.memory_space<vmem>>, vector<64x128xf32>
    %c0_7 = arith.constant 0 : index
    %c0_8 = arith.constant 0 : index
    %4 = vector.load %arg5[%c0_7, %c0_8] : memref<32x16xf32, #tpu.memory_space<vmem>>, vector<32x16xf32>
    %cst = arith.constant dense<0.000000e+00> : vector<16x64xf32>
    %5 = tpu.matmul %0, %1, %cst {dimension_numbers = #tpu.dot_dimension_numbers<[1], [0], [0], [1], [0, 0, 1, 1], [], []>} : vector<16x128xf32>, vector<128x64xf32>, vector<16x64xf32> -> vector<16x64xf32>
    %6 = vector.broadcast %2 : vector<1x64xf32> to vector<16x64xf32>
    %7 = arith.addf %5, %6 : vector<16x64xf32>
    %cst_9 = arith.constant 0.000000e+00 : f32
    %8 = vector.broadcast %cst_9 : f32 to vector<16x64xf32>
    %9 = arith.maximumf %7, %8 : vector<16x64xf32>
    %cst_10 = arith.constant dense<0.000000e+00> : vector<16x128xf32>
    %10 = tpu.matmul %9, %3, %cst_10 {dimension_numbers = #tpu.dot_dimension_numbers<[1], [0], [0], [1], [0, 0, 1, 1], [], []>} : vector<16x64xf32>, vector<64x128xf32>, vector<16x128xf32> -> vector<16x128xf32>
    %cst_11 = arith.constant dense<0.000000e+00> : vector<32x128xf32>
    %11 = tpu.matmul %4, %10, %cst_11 {dimension_numbers = #tpu.dot_dimension_numbers<[1], [0], [0], [1], [0, 0, 1, 1], [], []>} : vector<32x16xf32>, vector<16x128xf32>, vector<32x128xf32> -> vector<32x128xf32>
    %c0_12 = arith.constant 0 : index
    %c0_13 = arith.constant 0 : index
    %12 = vector.load %arg6[%c0_12, %c0_13] : memref<128x64xf32, #tpu.memory_space<vmem>>, vector<128x64xf32>
    %c0_14 = arith.constant 0 : index
    %c0_15 = arith.constant 0 : index
    %13 = vector.load %arg7[%c0_14, %c0_15] : memref<1x64xf32, #tpu.memory_space<vmem>>, vector<1x64xf32>
    %c0_16 = arith.constant 0 : index
    %c0_17 = arith.constant 0 : index
    %14 = vector.load %arg8[%c0_16, %c0_17] : memref<64x128xf32, #tpu.memory_space<vmem>>, vector<64x128xf32>
    %c0_18 = arith.constant 0 : index
    %c0_19 = arith.constant 0 : index
    %15 = vector.load %arg9[%c0_18, %c0_19] : memref<64x32xf32, #tpu.memory_space<vmem>>, vector<64x32xf32>
    %cst_20 = arith.constant dense<0.000000e+00> : vector<32x64xf32>
    %16 = tpu.matmul %11, %12, %cst_20 {dimension_numbers = #tpu.dot_dimension_numbers<[1], [0], [0], [1], [0, 0, 1, 1], [], []>} : vector<32x128xf32>, vector<128x64xf32>, vector<32x64xf32> -> vector<32x64xf32>
    %17 = vector.broadcast %13 : vector<1x64xf32> to vector<32x64xf32>
    %18 = arith.addf %16, %17 : vector<32x64xf32>
    %cst_21 = arith.constant 0.000000e+00 : f32
    %19 = vector.broadcast %cst_21 : f32 to vector<32x64xf32>
    %20 = arith.maximumf %18, %19 : vector<32x64xf32>
    %cst_22 = arith.constant dense<0.000000e+00> : vector<32x128xf32>
    %21 = tpu.matmul %20, %14, %cst_22 {dimension_numbers = #tpu.dot_dimension_numbers<[1], [0], [0], [1], [0, 0, 1, 1], [], []>} : vector<32x64xf32>, vector<64x128xf32>, vector<32x128xf32> -> vector<32x128xf32>
    %cst_23 = arith.constant dense<0.000000e+00> : vector<64x128xf32>
    %22 = tpu.matmul %15, %21, %cst_23 {dimension_numbers = #tpu.dot_dimension_numbers<[1], [0], [0], [1], [0, 0, 1, 1], [], []>} : vector<64x32xf32>, vector<32x128xf32>, vector<64x128xf32> -> vector<64x128xf32>
    %c0_24 = arith.constant 0 : index
    %c0_25 = arith.constant 0 : index
    %23 = vector.load %arg10[%c0_24, %c0_25] : memref<64x128xf32, #tpu.memory_space<vmem>>, vector<64x128xf32>
    tpu.vector_store %arg10[%c0_24, %c0_25], %22 {strides = array<i32>} : memref<64x128xf32, #tpu.memory_space<vmem>>, vector<64x128xf32>,
    return
  }
  func.func @transform_0(%arg0: i32) -> (i32, i32) {
    %c0_i32 = arith.constant 0 : i32
    %c0_i32_0 = arith.constant 0 : i32
    return %arg0, %c0_i32 : i32, i32
  }
  func.func @transform_1(%arg0: i32) -> (i32, i32) {
    %c0_i32 = arith.constant 0 : i32
    %c0_i32_0 = arith.constant 0 : i32
    %c0_i32_1 = arith.constant 0 : i32
    return %c0_i32, %c0_i32_0 : i32, i32
  }
  func.func @transform_2(%arg0: i32) -> (i32, i32) {
    %c0_i32 = arith.constant 0 : i32
    %c0_i32_0 = arith.constant 0 : i32
    %c0_i32_1 = arith.constant 0 : i32
    return %c0_i32, %c0_i32_0 : i32, i32
  }
  func.func @transform_3(%arg0: i32) -> (i32, i32) {
    %c0_i32 = arith.constant 0 : i32
    %c0_i32_0 = arith.constant 0 : i32
    %c0_i32_1 = arith.constant 0 : i32
    return %c0_i32, %c0_i32_0 : i32, i32
  }
  func.func @transform_4(%arg0: i32) -> (i32, i32) {
    %c0_i32 = arith.constant 0 : i32
    %c0_i32_0 = arith.constant 0 : i32
    %c0_i32_1 = arith.constant 0 : i32
    return %c0_i32, %c0_i32_0 : i32, i32
  }
  func.func @transform_5(%arg0: i32) -> (i32, i32) {
    %c0_i32 = arith.constant 0 : i32
    %c0_i32_0 = arith.constant 0 : i32
    %c0_i32_1 = arith.constant 0 : i32
    return %c0_i32, %c0_i32_0 : i32, i32
  }
  func.func @transform_6(%arg0: i32) -> (i32, i32) {
    %c0_i32 = arith.constant 0 : i32
    %c0_i32_0 = arith.constant 0 : i32
    %c0_i32_1 = arith.constant 0 : i32
    return %c0_i32, %c0_i32_0 : i32, i32
  }
  func.func @transform_7(%arg0: i32) -> (i32, i32) {
    %c0_i32 = arith.constant 0 : i32
    %c0_i32_0 = arith.constant 0 : i32
    %c0_i32_1 = arith.constant 0 : i32
    return %c0_i32, %c0_i32_0 : i32, i32
  }
  func.func @transform_8(%arg0: i32) -> (i32, i32) {
    %c0_i32 = arith.constant 0 : i32
    %c0_i32_0 = arith.constant 0 : i32
    %c0_i32_1 = arith.constant 0 : i32
    return %c0_i32, %c0_i32_0 : i32, i32
  }
  func.func @transform_9(%arg0: i32) -> (i32, i32) {
    %c0_i32 = arith.constant 0 : i32
    %c0_i32_0 = arith.constant 0 : i32
    return %arg0, %c0_i32 : i32, i32
  }
}

</mosaic_0001>

<bundles_post_ra>
// kernel: up_forward.1
= control target key start
LH: loop header
LB: loop body
LE: loop exit
PB: predicated region body
PF: predicated region fallthrough
CT: control target
= control target key end

     0   :  { %s1480_s30 = smov 0   ;;  %s1709_s0 = inlined_call_operand.vmem [shape: f32[32,128], index: 0, kind: input, shape index: {}]   ;;  %s1710_s1 = inlined_call_operand.vmem [shape: f32[128,64], index: 1, kind: input, shape index: {}]   ;;  %s1711_s2 = inlined_call_operand.vmem [shape: f32[1,64], index: 2, kind: input, shape index: {}]   ;;  %s1712_s3 = inlined_call_operand.vmem [shape: f32[64,128], index: 3, kind: input, shape index: {}]   ;;  %s1713_s4 = inlined_call_operand.vmem [shape: f32[32,16], index: 4, kind: input, shape index: {}]   ;;  %s1714_s5 = inlined_call_operand.vmem [shape: f32[128,64], index: 5, kind: input, shape index: {}]   ;;  %s1715_s6 = inlined_call_operand.vmem [shape: f32[1,64], index: 6, kind: input, shape index: {}]   ;;  %s1716_s7 = inlined_call_operand.vmem [shape: f32[64,128], index: 7, kind: input, shape index: {}]   ;;  %s1717_s8 = inlined_call_operand.vmem [shape: f32[64,32], index: 8, kind: input, shape index: {}]   ;;  %s1718_s9 = inlined_call_operand.vmem [shape: f32[128,128], index: 9, kind: output, shape index: {}]  }
   0x1 LB: > { %s1049_s10 = sadd.s32 4294967295, %s1428_s30   ;;  %p1053_p0 = scmp.ge.s32.totalorder %s1428_s30, 1  ;;  %s1428_s30 = sphi %s1480_s30, %s19_s30  }
   0x2   : > { %p288_p1 = scmp.lt.s32.totalorder %s1428_s30, 3 }
   0x4   : > { %p289_p2 = pnand %p1053_p0, %p288_p1 }
   0x5   : > { %v338_v0 = vld [vmem:[%s1710_s1] sm:$0xff] (!%p289_p2)  ;;  %v339_v1 = vld [vmem:[%s1710_s1 + $0x8] sm:$0xff] (!%p289_p2)  ;;  %v340_v2 = vld [vmem:[%s1710_s1 + $0x10] sm:$0xff] (!%p289_p2)  ;;  %s1054_s17 = sshll.u32 (!%p289_p2), %s1049_s10, 1  ;;  %vm450_vm0 = vcmask (!%p289_p2), 523264   ;;  %vm532_vm1 = vcmask (!%p289_p2), 130048  }
   0x6   : > { %292 = sbr.rel (%p289_p2) target bundleno = 1354 (0x54a), region = 56  ;;  %v1302_v3 = vpack.c.bf16 (!%p289_p2), %v339_v1, %v338_v0  ;;  %v341_v4 = vld [vmem:[%s1710_s1 + $0x18] sm:$0xff] (!%p289_p2)  ;;  %p325_p3 = scmp.lt.s32.totalorder (!%p289_p2), %s1054_s17, 3  ;;  %v342_v6 = vld [vmem:[%s1710_s1 + $0x20] sm:$0xff] (!%p289_p2)  ;;  %v343_v7 = vld [vmem:[%s1710_s1 + $0x28] sm:$0xff] (!%p289_p2)  ;;  %vm855_vm2 = vcmask (!%p289_p2), 261120  }
   0x7   : > { %v1306_v5 = vpack.c.bf16 (!%p289_p2), %v341_v4, %v340_v2  ;;  %v1310_v8 = vpack.c.bf16 (!%p289_p2), %v343_v7, %v342_v6  ;;  %v344_v9 = vld [vmem:[%s1710_s1 + $0x30] sm:$0xff] (!%p289_p2)  ;;  %v355_v10 = vld [vmem:[%s1712_s3] sm:$0xff] (!%p289_p2)  ;;  %v356_v11 = vld [vmem:[%s1712_s3 + $0x8] sm:$0xff] (!%p289_p2)  ;;  %s1056_s27 = sshll.u32 (!%p289_p2), %s1049_s10, 3 }
   0x8   : > { %1303 = vmatprep.subr.bf16.mxu0 (!%p289_p2), %v1302_v3  ;;  %v345_v12 = vld [vmem:[%s1710_s1 + $0x38] sm:$0xff] (!%p289_p2)  ;;  %v1334_v13 = vpack.c.bf16 (!%p289_p2), %v356_v11, %v355_v10  ;;  %v357_v14 = vld [vmem:[%s1712_s3 + $0x10] sm:$0xff] (!%p289_p2)  ;;  %v359_v18 = vld [vmem:[%s1712_s3 + $0x20] sm:$0xff] (!%p289_p2)  ;;  %p331_p4 = scmp.lt.s32.totalorder (!%p289_p2), %s1056_s27, 15 }
   0x9   : > { %1305 = vmatpush3.bf16.msra.mxu0 (!%p289_p2), %v1302_v3  ;;  %v358_v15 = vld [vmem:[%s1712_s3 + $0x18] sm:$0xff] (!%p289_p2)  ;;  %v360_v19 = vld [vmem:[%s1712_s3 + $0x28] sm:$0xff] (!%p289_p2)  ;;  %v1314_v20 = vpack.c.bf16 (!%p289_p2), %v345_v12, %v344_v9  ;;  %v346_v21 = vld [vmem:[%s1710_s1 + $0x40] sm:$0xff] (!%p289_p2) }
   0xa   : > { %1307 = vmatprep.subr.bf16.mxu0 (!%p289_p2), %v1306_v5  ;;  %v1338_v17 = vpack.c.bf16 (!%p289_p2), %v358_v15, %v357_v14  ;;  %1335 = vmatprep.subr.bf16.mxu1 (!%p289_p2), %v1334_v13  ;;  %v347_v22 = vld [vmem:[%s1710_s1 + $0x48] sm:$0xff] (!%p289_p2)  ;;  %v1342_v23 = vpack.c.bf16 (!%p289_p2), %v360_v19, %v359_v18  ;;  %v348_v25 = vld [vmem:[%s1710_s1 + $0x50] sm:$0xff] (!%p289_p2)  ;;  %v349_v26 = vld [vmem:[%s1710_s1 + $0x58] sm:$0xff] (!%p289_p2) }
   0xb   : > { %1337 = vmatpush3.bf16.msra.mxu1 (!%p289_p2), %v1334_v13  ;;  %v1318_v24 = vpack.c.bf16 (!%p289_p2), %v347_v22, %v346_v21  ;;  %v1322_v27 = vpack.c.bf16 (!%p289_p2), %v349_v26, %v348_v25  ;;  %v350_v28 = vld [vmem:[%s1710_s1 + $0x60] sm:$0xff] (!%p289_p2)  ;;  %v351_v29 = vld [vmem:[%s1710_s1 + $0x68] sm:$0xff] (!%p289_p2)  ;;  %v352_v31 = vld [vmem:[%s1710_s1 + $0x70] sm:$0xff] (!%p289_p2) }
   0xc   : > { %1339 = vmatprep.subr.bf16.mxu1 (!%p289_p2), %v1338_v17  ;;  %v1326_v30 = vpack.c.bf16 (!%p289_p2), %v351_v29, %v350_v28  ;;  %v353_v32 = vld [vmem:[%s1710_s1 + $0x78] sm:$0xff] (!%p289_p2)  ;;  %v361_v35 = vld [vmem:[%s1712_s3 + $0x30] sm:$0xff] (!%p289_p2)  ;;  %v1058_v38 = vld [vmem:[%s1711_s2] ss:$0 sm:$0xff] (!%p289_p2) }
   0xd   : > { %s1720_s17 = smov (!%p325_p3, %s1054_s17), 3  ;;  %1309 = vmatpush3.bf16.msra.mxu0 %v1306_v5  ;;  %v1330_v33 = vpack.c.bf16 %v353_v32, %v352_v31  ;;  %v362_v36 = vld [vmem:[%s1712_s3 + $0x38] sm:$0xff]  ;;  %v363_v45 = vld [vmem:[%s1713_s4] sm:$0xff]  ;;  %v631_v47 = vld [vmem:[%s1714_s5 + $0x8] sm:$0xff]  ;;  %s1722_s27 = smov (!%p331_p4, %s1056_s27), 15 }
   0xe   : > { %s1055_s26 = sshll.u32 %s1720_s17, 3  ;;  %1311 = vmatprep.subr.bf16.mxu0 %v1310_v8  ;;  %v1346_v37 = vpack.c.bf16 %v362_v36, %v361_v35  ;;  %v630_v46 = vld [vmem:[%s1714_s5] sm:$0xff]  ;;  %v632_v52 = vld [vmem:[%s1714_s5 + $0x10] sm:$0xff]  ;;  %v633_v53 = vld [vmem:[%s1714_s5 + $0x18] sm:$0xff]  ;;  %s1057_s28 = sshll.u32 %s1722_s27, 3 }
   0xf   : > { %s1523_s16 = scalar_lea.vmem %s1709_s0, %s1055_s26  ;;  %1341 = vmatpush3.bf16.msra.mxu1 %v1338_v17  ;;  %v1354_v51 = vpack.c.bf16 %v631_v47, %v630_v46  ;;  %v364_v54 = vld [vmem:[%s1713_s4 + $0x8] sm:$0xff]  ;;  %v365_v55 = vld [vmem:[%s1713_s4 + $0x10] sm:$0xff]  ;;  %v1358_v56 = vpack.c.bf16 %v633_v53, %v632_v52  ;;  %v634_v57 = vld [vmem:[%s1714_s5 + $0x20] sm:$0xff]  ;;  %s334_s11 = scalar_lea.vmem %s1718_s9, %s1057_s28 }
  0x10   : > { %v336_v16 = vld [vmem:[%s1523_s16] sm:$0xff]  ;;  %1343 = vmatprep.subr.bf16.mxu1 %v1342_v23  ;;  %v337_v34 = vld [vmem:[%s1523_s16 + $0x8] sm:$0xff]  ;;  %v366_v59 = vld [vmem:[%s1713_s4 + $0x18] sm:$0xff] }
  0x11   : > { %1190 = vmatprep.mubr.f32.mxu0 %v336_v16  ;;  %1313 = vmatpush3.bf16.msra.mxu0 %v1310_v8  ;;  %v635_v58 = vld [vmem:[%s1714_s5 + $0x28] sm:$0xff]  ;;  %v636_v61 = vld [vmem:[%s1714_s5 + $0x30] sm:$0xff]  ;;  %v637_v62 = vld [vmem:[%s1714_s5 + $0x38] sm:$0xff] }
  0x12   : > { %1315 = vmatprep.subr.bf16.mxu0 %v1314_v20  ;;  %v1362_v60 = vpack.c.bf16 %v635_v58, %v634_v57  ;;  %v1366_v63 = vpack.c.bf16 %v637_v62, %v636_v61  ;;  %v638_v0 = vld [vmem:[%s1714_s5 + $0x40] sm:$0xff]  ;;  %v639_v1 = vld [vmem:[%s1714_s5 + $0x48] sm:$0xff]  ;;  %v640_v3 = vld [vmem:[%s1714_s5 + $0x50] sm:$0xff] }
  0x13   : > { %1345 = vmatpush3.bf16.msra.mxu1 %v1342_v23  ;;  %v1370_v2 = vpack.c.bf16 %v639_v1, %v638_v0  ;;  %v641_v4 = vld [vmem:[%s1714_s5 + $0x58] sm:$0xff]  ;;  %v642_v6 = vld [vmem:[%s1714_s5 + $0x60] sm:$0xff]  ;;  %v643_v7 = vld [vmem:[%s1714_s5 + $0x68] sm:$0xff] }
  0x14   : > { %1347 = vmatprep.subr.bf16.mxu1 %v1346_v37  ;;  %v1374_v5 = vpack.c.bf16 %v641_v4, %v640_v3  ;;  %v1378_v8 = vpack.c.bf16 %v643_v7, %v642_v6  ;;  %v644_v9 = vld [vmem:[%s1714_s5 + $0x70] sm:$0xff]  ;;  %v645_v10 = vld [vmem:[%s1714_s5 + $0x78] sm:$0xff]  ;;  %v647_v12 = vld [vmem:[%s1716_s7] sm:$0xff] }
  0x15   : > { %1317 = vmatpush3.bf16.msra.mxu0 %v1314_v20  ;;  %v1382_v11 = vpack.c.bf16 %v645_v10, %v644_v9  ;;  %v648_v13 = vld [vmem:[%s1716_s7 + $0x8] sm:$0xff]  ;;  %v649_v14 = vld [vmem:[%s1716_s7 + $0x10] sm:$0xff]  ;;  %v650_v16 = vld [vmem:[%s1716_s7 + $0x18] sm:$0xff] }
  0x16   : > { %1319 = vmatprep.subr.bf16.mxu0 %v1318_v24  ;;  %v1386_v15 = vpack.c.bf16 %v648_v13, %v647_v12  ;;  %v1390_v17 = vpack.c.bf16 %v650_v16, %v649_v14  ;;  %v651_v18 = vld [vmem:[%s1716_s7 + $0x20] sm:$0xff]  ;;  %v652_v19 = vld [vmem:[%s1716_s7 + $0x28] sm:$0xff]  ;;  %v653_v25 = vld [vmem:[%s1716_s7 + $0x30] sm:$0xff] }
  0x17   : > { %1349 = vmatpush3.bf16.msra.mxu1 %v1346_v37  ;;  %v1394_v20 = vpack.c.bf16 %v652_v19, %v651_v18  ;;  %v654_v26 = vld [vmem:[%s1716_s7 + $0x38] sm:$0xff]  ;;  %v1065_v28 = vld [vmem:[%s1715_s6] ss:$0 sm:$0xff] }
  0x18   : > { %v658_v52 = vld [vmem:[%s1717_s8 + $0x18] sm:$0xff]  ;;  %v659_v53 = vld [vmem:[%s1717_s8 + $0x20] sm:$0xff] }
  0x19   : > { %1321 = vmatpush3.bf16.msra.mxu0 %v1318_v24 }
  0x1a   : > { %1323 = vmatprep.subr.bf16.mxu0 %v1322_v27 }
  0x1d   : > { %1325 = vmatpush3.bf16.msra.mxu0 %v1322_v27  ;;  %v1398_v27 = vpack.c.bf16 %v654_v26, %v653_v25 }
  0x1e   : > { %1327 = vmatprep.subr.bf16.mxu0 %v1326_v30 }
  0x21   : > { %1329 = vmatpush3.bf16.msra.mxu0 %v1326_v30 }
  0x22   : > { %1331 = vmatprep.subr.bf16.mxu0 %v1330_v33 }
  0x25   : > { %1333 = vmatpush3.bf16.msra.mxu0 %v1330_v33 }
  0x26   : > { %1387 = vmatprep.subr.bf16.mxu0 %v1386_v15 }
  0x28   : > { %1191 = vmatmul.mubr.f32.vlgmr.msra.gmra.mrb[0].mxu0 %v337_v34 }
  0x29   : > { %1389 = vmatpush3.bf16.msra.mxu0 %v1386_v15 }
  0x2a   : > { %1391 = vmatprep.subr.bf16.mxu0 %v1390_v17 }
  0x2d   : > { %1393 = vmatpush3.bf16.msra.mxu0 %v1390_v17 }
  0x2e   : > { %1395 = vmatprep.subr.bf16.mxu0 %v1394_v20 }
  0x31   : > { %1397 = vmatpush3.bf16.msra.mxu0 %v1394_v20 }
  0x32   : > { %1399 = vmatprep.subr.bf16.mxu0 %v1398_v27 }
  0x35   : > { %1401 = vmatpush3.bf16.msra.mxu0 %v1398_v27 }
  0xfb   : > { %v1192_v39 = vpop.f32.mrb[0].mxu0 }
  0xfc   : > { %v445_v40 = vadd.f32 %v1192_v39, %v1058_v38  ;;  %v439_v41 = vpop.f32.mrb[1].mxu0 }
  0xfd   : > { %v440_v42 = vadd.f32 %v1058_v38, %v439_v41  ;;  %v655_v41 = vld [vmem:[%s1717_s8] sm:$0xff] }
  0xfe   : > { %v449_v44 = vmax.f32 %v445_v40, 0.0 }
  0xff   : > { %v448_v43 = vmax.f32 %v440_v42, 0.0  ;;  %v661_v42 = vld [vmem:[%s1717_s8 + $0x30] sm:$0xff] }
 0x101   : > { %1209 = vmatprep.mubr.msk.f32.mxu1 %vm450_vm0, %v448_v43 }
 0x102   : > { %1210 = vmatmul.mubr.msk.f32.vlgmr.msra.gmra.mrb[0].mxu1 %vm450_vm0, %v449_v44 }
 0x103   : > { %1216 = vmatprep.mubr.msk.f32.mxu1 %vm532_vm1, %v363_v45 }
 0x1d5   : > { %v1211_v48 = vpop.f32.mrb[0].mxu1 }
 0x1d6   : > { %v523_v49 = vpop.f32.mrb[1].mxu1 }
 0x1d7   : > { %v1350_v50 = vpack.c.bf16 %v1211_v48, %v523_v49  ;;  %v656_v49 = vld [vmem:[%s1717_s8 + $0x8] sm:$0xff] }
 0x1d9   : > { %1351 = vmatprep.subr.bf16.mxu1 %v1350_v50 }
 0x1da   : > { %1353 = vmatpush3.bf16.msra.mxu1 %v1350_v50  ;;  %v662_v50 = vld [vmem:[%s1717_s8 + $0x38] sm:$0xff] }
 0x1db   : > { %1355 = vmatprep.subr.bf16.mxu1 %v1354_v51 }
 0x1dd   : > { %1217 = vmatmul.mubr.msk.f32.vlgmr.msra.gmra.mrb[2].mxu1 %vm532_vm1, %v364_v54  ;;  %v660_v54 = vld [vmem:[%s1717_s8 + $0x28] sm:$0xff] }
 0x1de   : > { %1219 = vmatprep.mubr.msk.f32.mxu1 %vm532_vm1, %v365_v55  ;;  %1357 = vmatpush3.bf16.msra.mxu1 %v1354_v51  ;;  %v657_v51 = vld [vmem:[%s1717_s8 + $0x10] sm:$0xff] }
 0x1df   : > { %1359 = vmatprep.subr.bf16.mxu1 %v1358_v56 }
 0x1e1   : > { %1220 = vmatmul.mubr.msk.f32.gmra.mrb[4].mxu1 %vm532_vm1, %v366_v59 }
 0x1e2   : > { %1361 = vmatpush3.bf16.msra.mxu1 %v1358_v56 }
 0x1e3   : > { %1363 = vmatprep.subr.bf16.mxu1 %v1362_v60 }
 0x1e6   : > { %1365 = vmatpush3.bf16.msra.mxu1 %v1362_v60 }
 0x1e7   : > { %1367 = vmatprep.subr.bf16.mxu1 %v1366_v63 }
 0x1ea   : > { %1369 = vmatpush3.bf16.msra.mxu1 %v1366_v63 }
 0x1eb   : > { %1371 = vmatprep.subr.bf16.mxu1 %v1370_v2 }
 0x1ee   : > { %1373 = vmatpush3.bf16.msra.mxu1 %v1370_v2 }
 0x1ef   : > { %1375 = vmatprep.subr.bf16.mxu1 %v1374_v5 }
 0x1f2   : > { %1377 = vmatpush3.bf16.msra.mxu1 %v1374_v5 }
 0x1f3   : > { %1379 = vmatprep.subr.bf16.mxu1 %v1378_v8 }
 0x1f6   : > { %1381 = vmatpush3.bf16.msra.mxu1 %v1378_v8 }
 0x1f7   : > { %1383 = vmatprep.subr.bf16.mxu1 %v1382_v11 }
 0x1fa   : > { %1385 = vmatpush3.bf16.msra.mxu1 %v1382_v11 }
 0x2b0   : > { %v1218_v21 = vpop.f32.mrb[2].mxu1 }
 0x2b1   : > { %v611_v22 = vpop.f32.mrb[3].mxu1 }
 0x2b2   : > { %1254 = vmatprep.mubr.f32.mxu1 %v611_v22 }
 0x2b3   : > { %1255 = vmatmul.mubr.f32.vlgmr.msra.gmra.mrb[6].mxu1 %v1218_v21 }
 0x2b4   : > { %v1221_v23 = vpop.f32.mrb[4].mxu1 }
 0x2b5   : > { %v621_v24 = vpop.f32.mrb[5].mxu1 }
 0x2b6   : > { %1257 = vmatprep.mubr.f32.mxu1 %v621_v24 }
 0x2b7   : > { %1258 = vmatmul.mubr.f32.gmra.mrb[8].mxu1 %v1221_v23 }
 0x2b8   : > { %1299 = vmatprep.mubr.msk.f32.mxu1 %vm855_vm2, %v661_v42 }
 0x386   : > { %v1256_v29 = vpop.f32.mrb[6].mxu1 }
 0x387   : > { %v741_v30 = vadd.f32 %v1256_v29, %v1065_v28  ;;  %v735_v31 = vpop.f32.mrb[7].mxu1 }
 0x388   : > { %v736_v32 = vadd.f32 %v1065_v28, %v735_v31 }
 0x389   : > { %v755_v35 = vmax.f32 %v741_v30, 0.0 }
 0x38a   : > { %v754_v33 = vmax.f32 %v736_v32, 0.0  ;;  %v1259_v34 = vpop.f32.mrb[8].mxu1 }
 0x38b   : > { %v751_v36 = vadd.f32 %v1259_v34, %v1065_v28  ;;  %v745_v37 = vpop.f32.mrb[9].mxu1 }
 0x38c   : > { %v746_v38 = vadd.f32 %v1065_v28, %v745_v37  ;;  %1276 = vmatprep.mubr.msk.f32.mxu0 %vm450_vm0, %v754_v33 }
 0x38d   : > { %1277 = vmatmul.mubr.msk.f32.vlgmr.msra.gmra.mrb[2].mxu0 %vm450_vm0, %v755_v35  ;;  %v757_v40 = vmax.f32 %v751_v36, 0.0 }
 0x38e   : > { %v756_v39 = vmax.f32 %v746_v38, 0.0 }
 0x390   : > { %1279 = vmatprep.mubr.msk.f32.mxu0 %vm450_vm0, %v756_v39 }
 0x391   : > { %1280 = vmatmul.mubr.msk.f32.gmra.mrb[4].mxu0 %vm450_vm0, %v757_v40 }
 0x392   : > { %1290 = vmatprep.mubr.msk.f32.mxu0 %vm855_vm2, %v655_v41 }
 0x460   : > { %v1278_v43 = vpop.f32.mrb[2].mxu0 }
 0x461   : > { %v836_v44 = vpop.f32.mrb[3].mxu0 }
 0x462   : > { %v1402_v45 = vpack.c.bf16 %v1278_v43, %v836_v44 }
 0x464   : > { %v1281_v46 = vpop.f32.mrb[4].mxu0  ;;  %1403 = vmatprep.subr.bf16.mxu0 %v1402_v45  ;;  %1410 = vmatprep.subr.bf16.mxu1 %v1402_v45 }
 0x465   : > { %v846_v47 = vpop.f32.mrb[5].mxu0  ;;  %1405 = vmatpush3.bf16.msra.mxu0 %v1402_v45  ;;  %1412 = vmatpush3.bf16.msra.mxu1 %v1402_v45 }
 0x466   : > { %v1406_v48 = vpack.c.bf16 %v1281_v46, %v846_v47 }
 0x468   : > { %1407 = vmatprep.subr.bf16.mxu0 %v1406_v48  ;;  %1411 = vmatprep.subr.bf16.mxu1 %v1406_v48 }
 0x469   : > { %1409 = vmatpush3.bf16.msra.mxu0 %v1406_v48  ;;  %1413 = vmatpush3.bf16.msra.mxu1 %v1406_v48 }
 0x46c   : > { %1291 = vmatmul.mubr.msk.f32.vlgmr.msra.gmra.mrb[6].mxu0 %vm855_vm2, %v656_v49  ;;  %1300 = vmatmul.mubr.msk.f32.vlgmr.msra.gmra.mrb[10].mxu1 %vm855_vm2, %v662_v50 }
 0x46d   : > { %1293 = vmatprep.mubr.msk.f32.mxu0 %vm855_vm2, %v657_v51 }
 0x470   : > { %1294 = vmatmul.mubr.msk.f32.gmra.mrb[8].mxu0 %vm855_vm2, %v658_v52 }
 0x471   : > { %1296 = vmatprep.mubr.msk.f32.mxu0 %vm855_vm2, %v659_v53 }
 0x474   : > { %1297 = vmatmul.mubr.msk.f32.gmra.mrb[10].mxu0 %vm855_vm2, %v660_v54 }
 0x53f   : > { %v1292_v55 = vpop.f32.mrb[6].mxu0  ;;  %v1301_v56 = vpop.f32.mrb[10].mxu1 }
 0x540   : > { %986 = vst [vmem:[%s334_s11 + $0x8] sm:$0xff] %v1292_v55  ;;  %v946_v57 = vpop.f32.mrb[7].mxu0  ;;  %992 = vst [vmem:[%s334_s11 + $0x38] sm:$0xff] %v1301_v56  ;;  %v976_v58 = vpop.f32.mrb[11].mxu1 }
 0x541   : > { %985 = vst [vmem:[%s334_s11] sm:$0xff] %v946_v57  ;;  %991 = vst [vmem:[%s334_s11 + $0x30] sm:$0xff] %v976_v58 }
 0x543   : > { %v1295_v59 = vpop.f32.mrb[8].mxu0 }
 0x544   : > { %988 = vst [vmem:[%s334_s11 + $0x18] sm:$0xff] %v1295_v59  ;;  %v956_v60 = vpop.f32.mrb[9].mxu0 }
 0x545   : > { %987 = vst [vmem:[%s334_s11 + $0x10] sm:$0xff] %v956_v60 }
 0x547   : > { %v1298_v61 = vpop.f32.mrb[10].mxu0 }
 0x548   : > { %990 = vst [vmem:[%s334_s11 + $0x28] sm:$0xff] %v1298_v61  ;;  %v966_v62 = vpop.f32.mrb[11].mxu0 }
 0x549   : > { %989 = vst [vmem:[%s334_s11 + $0x20] sm:$0xff] %v966_v62 }
 0x54a PF: > { %s19_s30 = sadd.s32 1, %s1428_s30  }
 0x54b   : > { %p16_p5 = scmp.ge.s32.totalorder %s19_s30, 4  }
 0x54d   :  { %18 = sbr.rel (!%p16_p5) target bundleno = 1 (0x1), region = 86 }

</bundles_post_ra>
